<compile_context>
chip_gen: v5e
topology: v5e:2x2
jax: 0.10.0
libtpu: 0.0.40
codegen_flags: <defaults>
</compile_context>

<pallas_src>
import functools

import jax
import jax.numpy as jnp
from jax.experimental import pallas as pl
from jax.experimental.pallas import tpu as pltpu


_VMEM_LIMIT_BYTES = 32 * 1024 * 1024    # explicit scoped-VMEM limit (safe on v5e/v6e/v7x)
_VMEM_BUFFER_BUDGET = 24 * 1024 * 1024  # budget for the double-buffered x/y/out tiles
_TARGET_MIN_STEPS = 8                   # keep the grid long enough for megacore + pipelining


def _add_norm_kernel(x_ref, y_ref, gamma_ref, beta_ref, o_ref, *, eps):
    # x_ref, y_ref, o_ref: (tm, D); gamma_ref, beta_ref: (1, D)
    # TODO(synk): nn.Dropout omitted (eval/inference identity); training-mode dropout
    #             would need pltpu.prng_seed / prng_random_bits + 1/(1-p) scaling on Y.
    z = x_ref[...].astype(jnp.float32) + y_ref[...].astype(jnp.float32)
    mean = jnp.mean(z, axis=-1, keepdims=True)
    centered = z - mean
    var = jnp.mean(centered * centered, axis=-1, keepdims=True)
    inv = jax.lax.rsqrt(var + eps)                       # EUP rsqrt, keeps the VALU free
    gamma = gamma_ref[...].astype(jnp.float32)
    beta = beta_ref[...].astype(jnp.float32)
    o_ref[...] = (centered * inv * gamma + beta).astype(o_ref.dtype)


def _round_up(n, m):
    return ((n + m - 1) // m) * m


def _choose_tm(M, D, itemsize, row_align, requested_tm):
    # (a) VMEM cap: double-buffered x, y and out tiles must fit the buffer budget.
    per_row_bytes = 3 * 2 * D * itemsize
    tm_vmem = max(row_align,
                  (_VMEM_BUFFER_BUDGET // per_row_bytes) // row_align * row_align)
    tm = max(row_align, (min(requested_tm, tm_vmem) // row_align) * row_align)
    # (b) keep >= _TARGET_MIN_STEPS grid steps when the problem is big enough, so both
    #     v7x TensorCores get work and double-buffering overlaps compute with DMA.
    tm_grid = _round_up(pl.cdiv(M, _TARGET_MIN_STEPS), row_align)
    tm = min(tm, max(tm_grid, row_align))
    # (c) never larger than the (row-aligned) problem.
    tm = min(tm, _round_up(M, row_align))
    return max(row_align, tm)


def add_norm(x, y, gamma, beta, *, eps=1e-5, tm=2048, buffers=2):
    """out = LayerNorm(dropout(y) + x) with dropout = identity (eval mode).

    x, y: (..., D); gamma, beta: (D,).  Internal math is f32 regardless of I/O dtype.
    `buffers` selects the input pipeline depth (sweep 2 vs 3 per generation).
    """
    assert x.shape == y.shape
    D = x.shape[-1]
    M = 1
    for s in x.shape[:-1]:
        M *= s

    x2 = x.reshape(M, D)
    y2 = y.reshape(M, D)
    g2 = gamma.reshape(1, D)
    b2 = beta.reshape(1, D)

    itemsize = jnp.dtype(x.dtype).itemsize
    row_align = max(8, 32 // max(1, itemsize))   # 8 for f32, 16 for bf16, 32 for int8
    tm = _choose_tm(M, D, itemsize, row_align, tm)
    grid = (pl.cdiv(M, tm),)

    cost = pl.CostEstimate(
        flops=8 * M * D,                          # add + mean/var + normalize + affine
        transcendentals=M,                        # one rsqrt per row
        bytes_accessed=(3 * M * D + 2 * D) * itemsize,
    )

    def row_block(shape):
        if buffers == 2:                          # default pipeline depth
            return pl.BlockSpec(shape, lambda i: (i, 0))
        return pl.BlockSpec(shape, lambda i: (i, 0), pipeline_mode=pl.Buffered(buffers))

    out2 = pl.pallas_call(
        functools.partial(_add_norm_kernel, eps=eps),
        out_shape=jax.ShapeDtypeStruct((M, D), x.dtype),
        grid=grid,
        in_specs=[
            row_block((tm, D)),
            row_block((tm, D)),
            pl.BlockSpec((1, D), lambda i: (0, 0)),
            pl.BlockSpec((1, D), lambda i: (0, 0)),
        ],
        out_specs=pl.BlockSpec((tm, D), lambda i: (i, 0)),
        compiler_params=pltpu.CompilerParams(
            dimension_semantics=("parallel",),
            vmem_limit_bytes=_VMEM_LIMIT_BYTES,
        ),
        cost_estimate=cost,
    )(x2, y2, g2, b2)

    return out2.reshape(x.shape)


def add_norm_reference(x, y, gamma, beta, eps=1e-5):
    z = x.astype(jnp.float32) + y.astype(jnp.float32)
    mean = jnp.mean(z, axis=-1, keepdims=True)
    var = jnp.mean((z - mean) ** 2, axis=-1, keepdims=True)
    return (z - mean) * jax.lax.rsqrt(var + eps) * gamma + beta


if __name__ == "__main__":
    input_dim = 128      # lane-dense last dim (multiple of 128)
    batch, seq = 2, 8

    key = jax.random.PRNGKey(0)
    kx, ky, kg, kb, kx2, ky2, kx3, ky3 = jax.random.split(key, 8)

    gamma = 1.0 + 0.1 * jax.random.normal(kg, (input_dim,), dtype=jnp.float32)
    beta = 0.1 * jax.random.normal(kb, (input_dim,), dtype=jnp.float32)

    # Case 1: basic small f32 case (still yields a 2-step grid).
    X = jax.random.normal(kx, (batch, seq, input_dim), dtype=jnp.float32)
    Y = jax.random.normal(ky, (batch, seq, input_dim), dtype=jnp.float32)
    out = jax.block_until_ready(add_norm(X, Y, gamma, beta))
    ref = add_norm_reference(X, Y, gamma, beta)
    assert out.shape == X.shape
    assert jnp.allclose(out, ref, atol=1e-4, rtol=1e-4), "mismatch vs reference (main case)"

    # Case 2: non-divisible tail path (M = 33 rows -> partial last block, masked writeback).
    X2 = jax.random.normal(kx2, (3, 11, input_dim), dtype=jnp.float32)
    Y2 = jax.random.normal(ky2, (3, 11, input_dim), dtype=jnp.float32)
    out2 = jax.block_until_ready(add_norm(X2, Y2, gamma, beta, tm=16))
    ref2 = add_norm_reference(X2, Y2, gamma, beta)
    assert jnp.allclose(out2, ref2, atol=1e-4, rtol=1e-4), "mismatch vs reference (tail case)"

    # Case 3: larger M exercises the tile-budget / multi-step-grid path (8 steps of 512 rows),
    # plus bf16 I/O (half the HBM traffic; internal math stays f32, rows aligned to 16).
    X3 = jax.random.normal(kx3, (8, 512, input_dim), dtype=jnp.float32).astype(jnp.bfloat16)
    Y3 = jax.random.normal(ky3, (8, 512, input_dim), dtype=jnp.float32).astype(jnp.bfloat16)
    out3 = jax.block_until_ready(add_norm(X3, Y3, gamma, beta))
    ref3 = add_norm_reference(X3, Y3, gamma, beta)
    assert out3.dtype == jnp.bfloat16
    assert jnp.allclose(out3.astype(jnp.float32), ref3, atol=5e-2, rtol=5e-2), \
        "mismatch vs reference (bf16 case)"

    print("KERNEL_OK")
</pallas_src>

<mosaic_0001>
module attributes {stable_mosaic.version = 11 : i64} {
  func.func @_add_norm_kernel(%arg0: i32, %arg1: memref<8x128xf32, #tpu.memory_space<vmem>>, %arg2: memref<8x128xf32, #tpu.memory_space<vmem>>, %arg3: memref<1x128xf32, #tpu.memory_space<vmem>>, %arg4: memref<1x128xf32, #tpu.memory_space<vmem>>, %arg5: memref<8x128xf32, #tpu.memory_space<vmem>>) attributes {dimension_semantics = [#tpu.dimension_semantics<parallel>], iteration_bounds = array<i64: 2>, scalar_prefetch = 0 : i64, scratch_operands = 0 : i64, tpu.core_type = #tpu.core_type<tc>, window_params = [{transform_indices = @transform_0, window_bounds = array<i64: 8, 128>}, {transform_indices = @transform_1, window_bounds = array<i64: 8, 128>}, {pipeline_mode = #tpu.pipeline_mode<synchronous>, transform_indices = @transform_2, window_bounds = array<i64: 1, 128>}, {pipeline_mode = #tpu.pipeline_mode<synchronous>, transform_indices = @transform_3, window_bounds = array<i64: 1, 128>}, {transform_indices = @transform_4, window_bounds = array<i64: 8, 128>}]} {
    %c0 = arith.constant 0 : index
    %c0_0 = arith.constant 0 : index
    %0 = vector.load %arg1[%c0, %c0_0] : memref<8x128xf32, #tpu.memory_space<vmem>>, vector<8x128xf32>
    %c0_1 = arith.constant 0 : index
    %c0_2 = arith.constant 0 : index
    %1 = vector.load %arg2[%c0_1, %c0_2] : memref<8x128xf32, #tpu.memory_space<vmem>>, vector<8x128xf32>
    %2 = arith.addf %0, %1 : vector<8x128xf32>
    %cst = arith.constant dense<0.000000e+00> : vector<8xf32>
    %3 = vector.multi_reduction <add>, %2, %cst [1] : vector<8x128xf32> to vector<8xf32>
    %4 = vector.shape_cast %3 : vector<8xf32> to vector<8x1xf32>
    %cst_3 = arith.constant 1.280000e+02 : f32
    %5 = vector.broadcast %cst_3 : f32 to vector<8x1xf32>
    %6 = arith.divf %4, %5 : vector<8x1xf32>
    %7 = vector.broadcast %6 : vector<8x1xf32> to vector<8x128xf32>
    %8 = arith.subf %2, %7 : vector<8x128xf32>
    %9 = arith.mulf %8, %8 : vector<8x128xf32>
    %cst_4 = arith.constant dense<0.000000e+00> : vector<8xf32>
    %10 = vector.multi_reduction <add>, %9, %cst_4 [1] : vector<8x128xf32> to vector<8xf32>
    %11 = vector.shape_cast %10 : vector<8xf32> to vector<8x1xf32>
    %cst_5 = arith.constant 1.280000e+02 : f32
    %12 = vector.broadcast %cst_5 : f32 to vector<8x1xf32>
    %13 = arith.divf %11, %12 : vector<8x1xf32>
    %cst_6 = arith.constant 9.99999974E-6 : f32
    %14 = vector.broadcast %cst_6 : f32 to vector<8x1xf32>
    %15 = arith.addf %13, %14 : vector<8x1xf32>
    %16 = math.rsqrt %15 : vector<8x1xf32>
    %c0_7 = arith.constant 0 : index
    %c0_8 = arith.constant 0 : index
    %17 = vector.load %arg3[%c0_7, %c0_8] : memref<1x128xf32, #tpu.memory_space<vmem>>, vector<1x128xf32>
    %c0_9 = arith.constant 0 : index
    %c0_10 = arith.constant 0 : index
    %18 = vector.load %arg4[%c0_9, %c0_10] : memref<1x128xf32, #tpu.memory_space<vmem>>, vector<1x128xf32>
    %19 = vector.broadcast %16 : vector<8x1xf32> to vector<8x128xf32>
    %20 = arith.mulf %8, %19 : vector<8x128xf32>
    %21 = vector.broadcast %17 : vector<1x128xf32> to vector<8x128xf32>
    %22 = arith.mulf %20, %21 : vector<8x128xf32>
    %23 = vector.broadcast %18 : vector<1x128xf32> to vector<8x128xf32>
    %24 = arith.addf %22, %23 : vector<8x128xf32>
    %c0_11 = arith.constant 0 : index
    %c0_12 = arith.constant 0 : index
    %25 = vector.load %arg5[%c0_11, %c0_12] : memref<8x128xf32, #tpu.memory_space<vmem>>, vector<8x128xf32>
    tpu.vector_store %arg5[%c0_11, %c0_12], %24 {strides = array<i32>} : memref<8x128xf32, #tpu.memory_space<vmem>>, vector<8x128xf32>,
    return
  }
  func.func @transform_0(%arg0: i32) -> (i32, i32) {
    %c0_i32 = arith.constant 0 : i32
    %c0_i32_0 = arith.constant 0 : i32
    return %arg0, %c0_i32 : i32, i32
  }
  func.func @transform_1(%arg0: i32) -> (i32, i32) {
    %c0_i32 = arith.constant 0 : i32
    %c0_i32_0 = arith.constant 0 : i32
    return %arg0, %c0_i32 : i32, i32
  }
  func.func @transform_2(%arg0: i32) -> (i32, i32) {
    %c0_i32 = arith.constant 0 : i32
    %c0_i32_0 = arith.constant 0 : i32
    %c0_i32_1 = arith.constant 0 : i32
    return %c0_i32, %c0_i32_0 : i32, i32
  }
  func.func @transform_3(%arg0: i32) -> (i32, i32) {
    %c0_i32 = arith.constant 0 : i32
    %c0_i32_0 = arith.constant 0 : i32
    %c0_i32_1 = arith.constant 0 : i32
    return %c0_i32, %c0_i32_0 : i32, i32
  }
  func.func @transform_4(%arg0: i32) -> (i32, i32) {
    %c0_i32 = arith.constant 0 : i32
    %c0_i32_0 = arith.constant 0 : i32
    return %arg0, %c0_i32 : i32, i32
  }
}

</mosaic_0001>

<bundles_post_ra>
// kernel: tpu_custom_call.1
= control target key start
LH: loop header
LB: loop body
LE: loop exit
PB: predicated region body
PF: predicated region fallthrough
CT: control target
= control target key end

     0   :  { %s806_s0 = inlined_call_operand.hbm [shape: f32[16,128], index: 0, kind: input, shape index: {}]   ;;  %s807_s1 = inlined_call_operand.hbm [shape: f32[16,128], index: 1, kind: input, shape index: {}]   ;;  %s808_s2 = inlined_call_operand.vmem [shape: f32[1,128], index: 2, kind: input, shape index: {}]   ;;  %s809_s3 = inlined_call_operand.vmem [shape: f32[1,128], index: 3, kind: input, shape index: {}]   ;;  %s810_s4 = inlined_call_operand.hbm [shape: f32[16,128], index: 4, kind: output, shape index: {}]  }
   0x1   :  { %811 = sst [smem:[#allocation11_spill]] %s806_s0 }
   0x2   :  { %9 = vsyncpa [#allocation3], 0 }
   0x3   :  { %11 = vsyncpa [#allocation3 + $0x1], 0 }
   0x4   :  { %12 = vsyncpa [#allocation6], 0 }
   0x5   :  { %14 = vsyncpa [#allocation6 + $0x1], 0 }
   0x6   :  { %15 = vsyncpa [#allocation4], 0 }
   0x7   :  { %17 = vsyncpa [#allocation4 + $0x1], 0  ;;  %s635_s15 = smov 0   ;;  %s637_s16 = smov 0  }
   0x8   :  { %s639_s17 = smov 0   ;;  %s641_s18 = smov 0  }
   0x9 LB: > { %s656_s19 = sadd.s32 4294967295, %s607_s18   ;;  %s404_s20 = sadd.s32 4294967294, %s607_s18   ;;  %s607_s18 = sphi %s641_s18, %s823_s18   ;;  %s603_s17 = sphi %s639_s17, %s822_s17   ;;  %s599_s16 = sphi %s637_s16, %s821_s16   ;;  %s595_s15 = sphi %s635_s15, %s820_s15  }
   0xa   : > { %s660_s21 = sadd.s32 1, %s607_s18   ;;  %s30_s22 = sadd.s32 1, %s603_s17 }
   0xb   : > { %s27_s23 = ssub.s32 %s607_s18, %s660_s21  ;;  %p37_p0 = scmp.ne.s32.totalorder %s603_s17, %s599_s16 }
   0xc   : > { %p28_p1 = scmp.eq.s32.totalorder %s27_s23, 0  ;;  %p38_p2 = scmp.eq.s32.totalorder %s607_s18, 0 }
   0xd   : > { %p43_p3 = scmp.ne.s32.totalorder %s599_s16, %s595_s15  ;;  %p44_p4 = scmp.eq.s32.totalorder %s656_s19, 0 }
   0xe   : > { %s672_s24 = scalar_select %p28_p1, %s603_s17, %s30_s22  }
   0xf   : > { %p674_p5 = por %p38_p2, %p37_p0  ;;  %p678_p6 = por %p44_p4, %p43_p3 }
  0x10   : > { %p135_p7 = scmp.eq.s32.totalorder %s656_s19, 1  ;;  %p141_p8 = scmp.eq.s32.totalorder %s404_s20, 1 }
  0x11   : > { %p436_p10 = scmp.lt.s32.totalorder %s607_s18, 2  ;;  %s694_s29 = sand.u32 1, %s603_s17  }
  0x12   : > { %p685_p11 = por %p135_p7, %p37_p0  ;;  %p689_p12 = por %p141_p8, %p43_p3 }
  0x13   : > { %s408_s30 = sshll.u32 %s607_s18, 3  ;;  %s407_s5 = sshll.u32 %s694_s29, 3 }
  0x14   : > { %s816_s0 = sld [smem:[#allocation11_spill]]  ;;  %s171_s10 = scalar_lea.vmem [#allocation2], %s407_s5 }
  0x15   : > { %s179_s11 = sshll.u32 %s171_s10, 4  ;;  %p703_p13 = pnand %p436_p10, %p674_p5  ;;  %s180_s11 = int_to_ptr.vmem [resolvable:$true] %s179_s11 }
  0x16   : > { %p411_p0 = scmp.ge.s32.totalorder %s607_s18, 1  ;;  %p203_p1 = scmp.lt.s32.totalorder %s607_s18, 3 }
  0x17   : > { %s168_s13 = scalar_lea.sflag [#allocation3], %s694_s29  ;;  %p481_p3 = pneg %p703_p13 }
  0x1a   : > { %s175_s8 = scalar_lea.hbm %s816_s0, %s408_s30  ;;  %s484_s25 = scalar_lea.hbm %s816_s0, 16 }
  0x1b   : > { %s177_s9 = sshll.u32 %s175_s8, 4  ;;  %s178_s9 = int_to_ptr.hbm [resolvable:$true] %s177_s9 }
  0x1c   : > { %s477_s14 = sshra.s32 %s178_s9, 4  ;;  %s478_s14 = int_to_ptr.hbm [resolvable:$true] %s477_s14 }
  0x1d   : > { %s479_s20 = scalar_lea.hbm %s478_s14, 8  ;;  %p485_p5 = scmp.lt.s32.totalorder %s478_s14, %s816_s0 }
  0x1e   : > { %p480_p2 = scmp.ne.s32.totalorder %s478_s14, %s479_s20  ;;  %p486_p8 = scmp.lt.s32.totalorder %s484_s25, %s479_s20 }
  0x20   : > { %p482_p4 = pnand %p481_p3, %p480_p2  ;;  %p487_p10 = por %p486_p8, %p485_p5 }
  0x22   : > { %p483_p7 = pneg %p482_p4 }
  0x24   : > { %p488_p9 = pnand %p487_p10, %p483_p7 }
  0x26   : > { %491 = shalt.err (!%p488_p9)
}
  0x27   : > { %428 = dma.hbm_to_vmem [thread:$0]  (!%p703_p13), %s178_s9, 128, %s180_s11, %s168_s13  }
  0x28   : > { %p727_p2 = pnand %p411_p0, %p203_p1  ;;  %s194_s14 = scalar_lea.hbm %s807_s1, %s408_s30 }
  0x29   : > { %s196_s20 = sshll.u32 %s194_s14, 4  ;;  %s190_s23 = scalar_lea.vmem [#allocation5], %s407_s5  ;;  %s197_s20 = int_to_ptr.hbm [resolvable:$true] %s196_s20 }
  0x2a   : > { %s198_s25 = sshll.u32 %s190_s23, 4  ;;  %s187_s6 = scalar_lea.sflag [#allocation6], %s694_s29  ;;  %s199_s25 = int_to_ptr.vmem [resolvable:$true] %s198_s25 }
  0x2b   : > { %s507_s7 = sshra.s32 %s197_s20, 4  ;;  %s514_s13 = scalar_lea.hbm %s807_s1, 16  ;;  %s508_s7 = int_to_ptr.hbm [resolvable:$true] %s507_s7 }
  0x2c   : > { %s509_s0 = scalar_lea.hbm %s508_s7, 8  ;;  %p515_p4 = scmp.lt.s32.totalorder %s508_s7, %s807_s1 }
  0x2d   : > { %p510_p9 = scmp.ne.s32.totalorder %s508_s7, %s509_s0  ;;  %p516_p7 = scmp.lt.s32.totalorder %s514_s13, %s509_s0 }
  0x2f   : > { %p512_p0 = pnand %p510_p9, %p481_p3  ;;  %p517_p5 = por %p516_p7, %p515_p4 }
  0x31   : > { %p513_p1 = pneg %p512_p0 }
  0x33   : > { %p518_p8 = pnand %p517_p5, %p513_p1 }
  0x35   : > { %521 = shalt.err (!%p518_p8)
}
  0x36   : > { %431 = dma.hbm_to_vmem [thread:$0]  (!%p703_p13), %s197_s20, 128, %s199_s25, %s187_s6  }
  0x37   : > { %207 = sbr.rel (%p727_p2) target bundleno = 335 (0x14f), region = 36  ;;  %s749_s29 = sand.u32 (!%p727_p2), 1, %s599_s16  }
  0x38   : > { %s752_s5 = sshll.u32 (!%p727_p2), %s749_s29, 3  ;;  %s210_s22 = scalar_lea.sflag (!%p727_p2), [#allocation3], %s749_s29 }
  0x39   : > { %s213_s0 = scalar_lea.vmem (!%p727_p2), [#allocation2], %s752_s5 }
  0x3c   : > { %582 = dma.done.wait (%p678_p6), %s210_s22, 128  }
  0x3d   : > { %584 = vsyncadd (%p678_p6), %s210_s22, 4294967168  ;;  %s220_s12 = scalar_lea.sflag [#allocation6], %s749_s29  ;;  %s223_s8 = scalar_lea.vmem [#allocation5], %s752_s5 }
  0x3e   : > { %586 = dma.done.wait (%p678_p6), %s220_s12, 128  }
  0x3f   : > { %588 = vsyncadd (%p678_p6), %s220_s12, 4294967168  ;;  %v254_v0 = vld [vmem:[%s213_s0] sm:$0xff]  ;;  %v255_v1 = vld [vmem:[%s223_s8] sm:$0xff]  ;;  %v609_v3 = vmov 128.0   ;;  %s416_s26 = sshll.u32 %s656_s19, 3  ;;  %s253_s19 = scalar_lea.vmem [#allocation7], %s752_s5 }
  0x40   : > { %v256_v2 = vadd.f32 %v255_v1, %v254_v0  ;;  %473 = vrcp.f32 %v609_v3  ;;  %v471_v23 = vld [vmem:[%s808_s2] ss:$0 sm:$0xff]  ;;  %s306_s6 = scalar_lea.hbm %s810_s4, %s416_s26  ;;  %s308_s11 = sshll.u32 %s253_s19, 4  ;;  %s309_s11 = int_to_ptr.vmem [resolvable:$true] %s308_s11 }
  0x41   : > { %v472_v26 = vld [vmem:[%s809_s3] ss:$0 sm:$0xff]  ;;  %s310_s13 = sshll.u32 %s306_s6, 4  ;;  %s296_s10 = scalar_lea.sflag [#allocation4], %s749_s29  ;;  %s311_s13 = int_to_ptr.hbm [resolvable:$true] %s310_s13 }
  0x42   : > { %257 = vadd.xlane.f32.xlu0 %v256_v2  ;;  %s551_s30 = sshra.s32 %s311_s13, 4  ;;  %s557_s8 = scalar_lea.hbm %s810_s4, 16  ;;  %s552_s30 = int_to_ptr.hbm [resolvable:$true] %s551_s30 }
  0x43   : > { %s553_s22 = scalar_lea.hbm %s552_s30, 8  ;;  %p558_p10 = scmp.lt.s32.totalorder %s552_s30, %s810_s4 }
  0x44   : > { %p554_p6 = scmp.ne.s32.totalorder %s552_s30, %s553_s22  ;;  %p559_p2 = scmp.lt.s32.totalorder %s557_s8, %s553_s22 }
  0x46   : > { %v474_v4 = vpop.eup %473  ;;  %p555_p13 = pnand %p554_p6, %p685_p11  ;;  %p560_p9 = por %p559_p2, %p558_p10 }
  0x47   : > { %v260_v5 = vmul.f32 128.0, %v474_v4  ;;  %vm264_vm0 = vweird.f32 %v474_v4 }
  0x48   : > { %p556_p3 = pneg %p555_p13 }
  0x49   : > { %v261_v6 = vsub.f32 1.0, %v260_v5 }
  0x4a   : > { %p561_p0 = pnand %p560_p9, %p556_p3 }
  0x4b   : > { %v262_v7 = vmul.f32 %v474_v4, %v261_v6 }
  0x4d   : > { %v263_v8 = vadd.f32 %v474_v4, %v262_v7 }
  0x4f   : > { %v265_v9 = vsel %vm264_vm0, %v474_v4, %v263_v8 }
  0xb5   : > { %v258_v10 = vpop.xlane.xlu0 %257 }
  0xb6   : > { %v266_v11 = vmul.f32 %v265_v9, %v258_v10 }
  0xb8   : > { %v267_v12 = vsub.f32 %v256_v2, %v266_v11 }
  0xba   : > { %v268_v13 = vmul.f32 %v267_v12, %v267_v12 }
  0xbc   : > { %269 = vadd.xlane.f32.xlu0 %v268_v13 }
 0x12f   : > { %v270_v14 = vpop.xlane.xlu0 %269 }
 0x130   : > { %v271_v15 = vmul.f32 %v270_v14, %v265_v9 }
 0x132   : > { %v272_v16 = vadd.f32 1e-05, %v271_v15 }
 0x134   : > { %475 = vrsqrt.f32 %v272_v16  ;;  %vm279_vm2 = vweird.f32 %v272_v16 }
 0x13a   : > { %v476_v17 = vpop.eup %475 }
 0x13b   : > { %v274_v18 = vmul.f32 %v476_v17, %v272_v16  ;;  %vm280_vm1 = vweird.f32 %v476_v17 }
 0x13c   : > { %vm281_vm3 = vmor %vm279_vm2, %vm280_vm1 }
 0x13d   : > { %v275_v19 = vmul.f32 %v476_v17, %v274_v18 }
 0x13f   : > { %v276_v20 = vmul.f32 0.5, %v275_v19 }
 0x141   : > { %v277_v21 = vsub.f32 1.5, %v276_v20 }
 0x143   : > { %v278_v22 = vmul.f32 %v476_v17, %v277_v21 }
 0x145   : > { %v282_v24 = vsel %vm281_vm3, %v476_v17, %v278_v22 }
 0x146   : > { %v285_v25 = vmul.f32 %v282_v24, %v267_v12 }
 0x148   : > { %v289_v27 = vmul.f32 %v471_v23, %v285_v25 }
 0x14a   : > { %v293_v28 = vadd.f32 %v472_v26, %v289_v27 }
 0x14c   : > { %294 = vst [vmem:[%s253_s19] sm:$0xff] %v293_v28 }
 0x14d   : > { %564 = shalt.err (!%p561_p0)
}
 0x14e   : > { %423 = dma.vmem_to_hbm [thread:$0]  (%p685_p11), %s309_s11, 128, %s311_s13, %s296_s10  }
 0x14f PF: > { %s322_s29 = sand.u32 1, %s595_s15   ;;  %p819_p1 = scmp.ge.s32.totalorder %s607_s18, 2 }
 0x150   : > { %s323_s14 = scalar_lea.sflag [#allocation4], %s322_s29 }
 0x151   : > { %p433_p4 = pnand %p819_p1, %p689_p12 }
 0x153   : > { %p434_p7 = pneg %p433_p4 }
 0x155   : > { %590 = dma.done.wait (%p434_p7), %s323_s14, 128  }
 0x156   : > { %592 = vsyncadd (%p434_p7), %s323_s14, 4294967168  ;;  %p20_p5 = scmp.ge.s32.totalorder %s660_s21, 4   ;;  %s820_s15 = smov %s599_s16 }
 0x157   : > { %s821_s16 = smov %s603_s17  ;;  %s822_s17 = smov %s672_s24 }
 0x158   : > { %s823_s18 = smov %s660_s21  ;;  %22 = sbr.rel (!%p20_p5) target bundleno = 9 (0x9), region = 94 }
 0x15d   :  { %329 = vsyncpa [#allocation3], 1 }
 0x15e   :  { %331 = vsyncpa [#allocation3 + $0x1], 1 }
 0x15f   :  { %332 = vsyncpa [#allocation6], 1 }
 0x160   :  { %334 = vsyncpa [#allocation6 + $0x1], 1 }
 0x161   :  { %335 = vsyncpa [#allocation4], 1 }
 0x162   :  { %337 = vsyncpa [#allocation4 + $0x1], 1 }

</bundles_post_ra>
